<compile_context>
chip_gen: v7x
topology: tpu7x:2x2x1
jax: 0.10.0
libtpu: 0.0.40
codegen_flags: <defaults>
</compile_context>

<pallas_src>
import functools

import jax
import jax.numpy as jnp
from jax import lax
from jax.experimental import pallas as pl
from jax.experimental.pallas import tpu as pltpu


def _cdiv(a: int, b: int) -> int:
    return -(-a // b)


def _round_up(v: int, m: int) -> int:
    return _cdiv(v, m) * m


def _cmst_kernel(x_ref, w_ref, det_ref, acc_ref, *, tk, feat, ragged_k, geometric):
    """Accumulate qs = x @ W.T over the K grid axis, finalize det_g on the last step.

    x_ref:   (tm, tk)  input tile (native dtype)
    w_ref:   (tk, C)   weight tile, already transposed + zero-padded along K
    det_ref: (1, tm)   lane-dense per-row determinant (f32)
    acc_ref: (tm, C)   f32 VMEM accumulator (persistent across the K axis)
    """
    k = pl.program_id(1)
    last_k = pl.num_programs(1) - 1

    @pl.when(k == 0)
    def _init():
        acc_ref[...] = jnp.zeros_like(acc_ref)

    def accumulate(x_tile):
        # Canonical (M,K)x(K,N) MXU matmul, f32 accumulation.
        acc_ref[...] += lax.dot_general(
            x_tile, w_ref[...],
            dimension_numbers=(((1,), (0,)), ((), ())),
            preferred_element_type=jnp.float32,
        )

    if ragged_k:
        # Boundary block contents beyond the real feature extent are
        # unspecified -> mask the tail columns, but only on the last K step.
        @pl.when(k != last_k)
        def _body():
            accumulate(x_ref[...])

        @pl.when(k == last_k)
        def _tail():
            x_tile = x_ref[...]
            col = lax.broadcasted_iota(jnp.int32, x_tile.shape, 1) + k * tk
            accumulate(jnp.where(col < feat, x_tile, jnp.zeros_like(x_tile)))
    else:
        accumulate(x_ref[...])

    @pl.when(k == last_k)
    def _finalize():
        qs = acc_ref[...]                                   # (tm, C) f32
        if geometric:                                       # quantum_channels == 2
            a = jax.nn.sigmoid(qs[:, 0:1])                  # (tm, 1)
            b = 1.0 - a
            c = jnp.tanh(qs[:, 1:2]) * jnp.sqrt(a * b)
            det = (a - 0.5) * (b - 0.5) - c * c
        else:                                               # unbiased variance - 0.25
            C = qs.shape[1]
            mean = jnp.mean(qs, axis=1, keepdims=True)
            det = jnp.sum((qs - mean) ** 2, axis=1, keepdims=True) / (C - 1) - 0.25
        det_ref[...] = jnp.transpose(det)                   # (1, tm) lane-dense writeback


def _pick_tiling(B: int, F: int, itemsize: int, tk_max: int):
    """Generation-aware tile sizes + scoped-VMEM limit."""
    vmem_cap = 128 * 1024 * 1024
    try:
        vmem_cap = int(pltpu.get_tpu_info().vmem_capacity_bytes)
    except Exception:
        pass  # fall back to the conservative 128 MiB assumption

    if vmem_cap <= 80 * 1024 * 1024:
        # v7x-class: 64 MiB per TensorCore. ~12 MiB x tile (24 MiB double
        # buffered) and a 44 MiB scoped limit leave headroom for weight/acc/out.
        x_tile_budget = 12 * 1024 * 1024
        vmem_limit = 44 * 1024 * 1024
    else:
        # v5e/v6e: 128 MiB VMEM. 8 MiB tiles already put v6e >~97% of the HBM
        # roofline; v5e gains little from bigger tiles but is not hurt.
        x_tile_budget = 8 * 1024 * 1024
        vmem_limit = 48 * 1024 * 1024

    # Feature (reduction) tile: whole F if it fits, else a lane-aligned chunk.
    tk = F if F <= tk_max else max(128, (tk_max // 128) * 128)

    # Batch tile: as large as the budget allows, multiple of 8 sublanes.
    tm_cap = max(8, (x_tile_budget // (tk * itemsize)) // 8 * 8)
    b_r8 = _round_up(max(B, 1), 8)
    tm = min(tm_cap, b_r8)
    if b_r8 > 128:
        # Megacore: keep >= 2 (typically 4) M tiles so dimension_semantics
        # ("parallel", ...) can shard the batch axis across both v7x cores,
        # while never shrinking tiles below 128 rows.
        tm = min(tm, max(128, _round_up(_cdiv(B, 4), 8)))
    return tm, tk, vmem_limit


def cmst_linear_adapter_forward(x, weight, *, tk_max: int = 2048):
    """CMST linear adapter forward. Returns (x, det_g) like the PyTorch module.

    x:      (batch, input_features)
    weight: (quantum_channels, input_features)   -- nn.Linear weight layout
    det_g is computed/returned in float32.
    """
    B, F = x.shape
    C, Fw = weight.shape
    assert F == Fw, "weight must have shape (quantum_channels, input_features)"

    itemsize = jnp.dtype(x.dtype).itemsize
    tm, tk, vmem_limit = _pick_tiling(B, F, itemsize, tk_max)
    num_m = _cdiv(B, tm)
    num_k = _cdiv(F, tk)
    ragged_k = (F % tk) != 0

    # Weight: transpose once to (F, C) (canonical MXU stationary operand) and
    # zero-pad the K tail so every (tk, C) block is fully defined.  Cast to
    # x.dtype (nn.Linear requires matching dtypes; a bf16 x implies bf16 weight).
    # x itself is NOT copied/padded -- that extra HBM pass was the main cost.
    F_pad = num_k * tk
    w_t = jnp.transpose(weight).astype(x.dtype)            # (F, C)
    if F_pad != F:
        w_t = jnp.zeros((F_pad, C), w_t.dtype).at[:F, :].set(w_t)

    kernel = functools.partial(
        _cmst_kernel, tk=tk, feat=F, ragged_k=ragged_k, geometric=(C == 2))

    w_bytes = F_pad * C * jnp.dtype(w_t.dtype).itemsize
    cost = pl.CostEstimate(
        flops=2 * B * F * C + 12 * B,
        transcendentals=(3 * B) if C == 2 else 0,
        bytes_accessed=B * F * itemsize + w_bytes + num_m * tm * 4,
    )

    det_tiles = pl.pallas_call(
        kernel,
        out_shape=jax.ShapeDtypeStruct((num_m, tm), jnp.float32),
        grid_spec=pltpu.PrefetchScalarGridSpec(
            num_scalar_prefetch=0,
            grid=(num_m, num_k),                              # reduction axis last
            in_specs=[
                pl.BlockSpec((tm, tk), lambda i, k: (i, k)),  # x HBM stream
                pl.BlockSpec((tk, C), lambda i, k: (k, 0)),   # tiny weight chunk
            ],
            out_specs=pl.BlockSpec((1, tm), lambda i, k: (i, 0)),
            scratch_shapes=[pltpu.VMEM((tm, C), jnp.float32)],
        ),
        compiler_params=pltpu.CompilerParams(
            dimension_semantics=("parallel", "arbitrary"),
            vmem_limit_bytes=vmem_limit,
        ),
        cost_estimate=cost,
    )(x, w_t)

    # Garbage rows from the ragged last batch tile are dropped here.
    det_g = det_tiles.reshape(-1)[:B]
    return x, det_g


# ----------------------------------------------------------------------------
# Host-side init + reference (test harness only; not part of the forward).
# ----------------------------------------------------------------------------
def _orthogonal_weight(key, rows, cols, dtype=jnp.float32):
    """nn.init.orthogonal_-style init (orthonormal rows when rows <= cols)."""
    g = jax.random.normal(key, (cols, rows), dtype=jnp.float32)
    q, r = jnp.linalg.qr(g)
    q = q * jnp.sign(jnp.diag(r))[None, :]
    return q.T.astype(dtype)


def _reference(x, weight):
    qs = jnp.einsum("bf,cf->bc", x.astype(jnp.float32), weight.astype(jnp.float32),
                    precision=lax.Precision.HIGHEST)
    if weight.shape[0] == 2:
        a = jax.nn.sigmoid(qs[:, 0])
        b = 1.0 - a
        c = jnp.tanh(qs[:, 1]) * jnp.sqrt(a * b)
        return (a - 0.5) * (b - 0.5) - c * c
    return jnp.var(qs, axis=1, ddof=1) - 0.25


if __name__ == "__main__":
    key = jax.random.PRNGKey(0)
    k_x, k_w2, k_w4, k_x2, k_w2b = jax.random.split(key, 5)

    # --- primary small shapes: batch=8, input_features=32, channels=2 ---
    batch, input_features = 8, 32
    x = jax.random.normal(k_x, (batch, input_features), dtype=jnp.float32)
    w2 = _orthogonal_weight(k_w2, 2, input_features)

    x_out, det_g = cmst_linear_adapter_forward(x, w2)
    jax.block_until_ready((x_out, det_g))
    assert x_out.shape == (batch, input_features)
    assert det_g.shape == (batch,)
    assert bool(jnp.allclose(x_out, x))
    assert bool(jnp.allclose(det_g, _reference(x, w2), atol=1e-4, rtol=1e-4))

    # --- fallback path: quantum_channels != 2 (unbiased variance - 0.25) ---
    w4 = _orthogonal_weight(k_w4, 4, input_features)
    _, det4 = cmst_linear_adapter_forward(x, w4)
    jax.block_until_ready(det4)
    assert det4.shape == (batch,)
    assert bool(jnp.allclose(det4, _reference(x, w4), atol=1e-4, rtol=1e-4))

    # --- ragged batch + ragged reduction tail (exercises in-kernel masking) ---
    b2, f2 = 30, 160
    x2 = jax.random.normal(k_x2, (b2, f2), dtype=jnp.float32)
    w2b = _orthogonal_weight(k_w2b, 2, f2)
    _, det2b = cmst_linear_adapter_forward(x2, w2b, tk_max=128)   # forces 2 ragged K tiles
    jax.block_until_ready(det2b)
    assert det2b.shape == (b2,)
    assert bool(jnp.allclose(det2b, _reference(x2, w2b), atol=1e-4, rtol=1e-4))

    print("KERNEL_OK")
</pallas_src>

<mosaic_0001>
module attributes {stable_mosaic.version = 11 : i64} {
  func.func @_cmst_kernel(%arg0: i32, %arg1: i32, %arg2: memref<8x32xf32, #tpu.memory_space<vmem>>, %arg3: memref<32x2xf32, #tpu.memory_space<vmem>>, %arg4: memref<1x8xf32, #tpu.memory_space<vmem>>, %arg5: memref<8x2xf32, #tpu.memory_space<vmem>>) attributes {dimension_semantics = [#tpu.dimension_semantics<parallel>, #tpu.dimension_semantics<arbitrary>], iteration_bounds = array<i64: 1, 1>, scalar_prefetch = 0 : i64, scratch_operands = 1 : i64, tpu.core_type = #tpu.core_type<tc>, window_params = [{transform_indices = @transform_0, window_bounds = array<i64: 8, 32>}, {transform_indices = @transform_1, window_bounds = array<i64: 32, 2>}, {transform_indices = @transform_2, window_bounds = array<i64: 1, 8>}]} {
    %c0_i32 = arith.constant 0 : i32
    %0 = arith.cmpi eq, %arg1, %c0_i32 : i32
    %1 = arith.extui %0 : i1 to i32
    %c0_i32_0 = arith.constant 0 : i32
    %2 = arith.cmpi ne, %1, %c0_i32_0 : i32
    scf.if %2 {
      %cst_10 = arith.constant 0.000000e+00 : f32
      %12 = vector.broadcast %cst_10 : f32 to vector<8x2xf32>
      %c0_11 = arith.constant 0 : index
      %c0_12 = arith.constant 0 : index
      %13 = vector.load %arg5[%c0_11, %c0_12] : memref<8x2xf32, #tpu.memory_space<vmem>>, vector<8x2xf32>
      tpu.vector_store %arg5[%c0_11, %c0_12], %12 {strides = array<i32>} : memref<8x2xf32, #tpu.memory_space<vmem>>, vector<8x2xf32>,
    } else {
    }
    %c0 = arith.constant 0 : index
    %c0_1 = arith.constant 0 : index
    %3 = vector.load %arg2[%c0, %c0_1] : memref<8x32xf32, #tpu.memory_space<vmem>>, vector<8x32xf32>
    %c0_2 = arith.constant 0 : index
    %c0_3 = arith.constant 0 : index
    %4 = vector.load %arg5[%c0_2, %c0_3] : memref<8x2xf32, #tpu.memory_space<vmem>>, vector<8x2xf32>
    %c0_4 = arith.constant 0 : index
    %c0_5 = arith.constant 0 : index
    %5 = vector.load %arg3[%c0_4, %c0_5] : memref<32x2xf32, #tpu.memory_space<vmem>>, vector<32x2xf32>
    %cst = arith.constant dense<0.000000e+00> : vector<8x2xf32>
    %6 = tpu.matmul %3, %5, %cst {dimension_numbers = #tpu.dot_dimension_numbers<[1], [0], [0], [1], [0, 0, 1, 1], [], []>} : vector<8x32xf32>, vector<32x2xf32>, vector<8x2xf32> -> vector<8x2xf32>
    %7 = arith.addf %4, %6 : vector<8x2xf32>
    %c0_6 = arith.constant 0 : index
    %c0_7 = arith.constant 0 : index
    %8 = vector.load %arg5[%c0_6, %c0_7] : memref<8x2xf32, #tpu.memory_space<vmem>>, vector<8x2xf32>
    tpu.vector_store %arg5[%c0_6, %c0_7], %7 {strides = array<i32>} : memref<8x2xf32, #tpu.memory_space<vmem>>, vector<8x2xf32>,
    %c0_i32_8 = arith.constant 0 : i32
    %9 = arith.cmpi eq, %arg1, %c0_i32_8 : i32
    %10 = arith.extui %9 : i1 to i32
    %c0_i32_9 = arith.constant 0 : i32
    %11 = arith.cmpi ne, %10, %c0_i32_9 : i32
    scf.if %11 {
      %c0_10 = arith.constant 0 : index
      %c0_11 = arith.constant 0 : index
      %12 = vector.load %arg5[%c0_10, %c0_11] : memref<8x2xf32, #tpu.memory_space<vmem>>, vector<8x2xf32>
      %13 = vector.extract_strided_slice %12 {offsets = [0, 0], sizes = [8, 1], strides = [1, 1]} : vector<8x2xf32> to vector<8x1xf32>
      %14 = arith.negf %13 : vector<8x1xf32>
      %15 = math.exp %14 : vector<8x1xf32>
      %cst_12 = arith.constant 1.000000e+00 : f32
      %16 = vector.broadcast %cst_12 : f32 to vector<8x1xf32>
      %17 = arith.addf %16, %15 : vector<8x1xf32>
      %18 = arith.divf %16, %17 : vector<8x1xf32>
      %cst_13 = arith.constant 1.000000e+00 : f32
      %19 = vector.broadcast %cst_13 : f32 to vector<8x1xf32>
      %20 = arith.subf %19, %18 : vector<8x1xf32>
      %21 = vector.extract_strided_slice %12 {offsets = [0, 1], sizes = [8, 1], strides = [1, 1]} : vector<8x2xf32> to vector<8x1xf32>
      %22 = math.tanh %21 : vector<8x1xf32>
      %23 = arith.mulf %18, %20 : vector<8x1xf32>
      %24 = math.sqrt %23 : vector<8x1xf32>
      %25 = arith.mulf %22, %24 : vector<8x1xf32>
      %cst_14 = arith.constant 5.000000e-01 : f32
      %26 = vector.broadcast %cst_14 : f32 to vector<8x1xf32>
      %27 = arith.subf %18, %26 : vector<8x1xf32>
      %cst_15 = arith.constant 5.000000e-01 : f32
      %28 = vector.broadcast %cst_15 : f32 to vector<8x1xf32>
      %29 = arith.subf %20, %28 : vector<8x1xf32>
      %30 = arith.mulf %27, %29 : vector<8x1xf32>
      %31 = arith.mulf %25, %25 : vector<8x1xf32>
      %32 = arith.subf %30, %31 : vector<8x1xf32>
      %33 = tpu.transpose %32, [1, 0] : vector<8x1xf32> -> vector<1x8xf32>
      %c0_16 = arith.constant 0 : index
      %c0_17 = arith.constant 0 : index
      %34 = vector.load %arg4[%c0_16, %c0_17] : memref<1x8xf32, #tpu.memory_space<vmem>>, vector<1x8xf32>
      tpu.vector_store %arg4[%c0_16, %c0_17], %33 {strides = array<i32>} : memref<1x8xf32, #tpu.memory_space<vmem>>, vector<1x8xf32>,
    } else {
    }
    return
  }
  func.func @transform_0(%arg0: i32, %arg1: i32) -> (i32, i32) {
    %c0_i32 = arith.constant 0 : i32
    return %arg0, %arg1 : i32, i32
  }
  func.func @transform_1(%arg0: i32, %arg1: i32) -> (i32, i32) {
    %c0_i32 = arith.constant 0 : i32
    %c0_i32_0 = arith.constant 0 : i32
    return %arg1, %c0_i32 : i32, i32
  }
  func.func @transform_2(%arg0: i32, %arg1: i32) -> (i32, i32) {
    %c0_i32 = arith.constant 0 : i32
    %c0_i32_0 = arith.constant 0 : i32
    return %arg0, %c0_i32 : i32, i32
  }
}

</mosaic_0001>

<bundles_post_ra>
// kernel: tpu_custom_call.1
= control target key start
LH: loop header
LB: loop body
LE: loop exit
PB: predicated region body
PF: predicated region fallthrough
CT: control target
= control target key end

     0   :  { %vm16_vm0 = vcmask 15360   ;;  %v247_v3 = vmov 0.0|0.0   ;;  %v248_v6 = vmov 0.0   ;;  %s297_s0 = inlined_call_operand.vmem [shape: f32[8,32], index: 0, kind: input, shape index: {}]   ;;  %s298_s1 = inlined_call_operand.vmem [shape: f32[32,2], index: 1, kind: input, shape index: {}]   ;;  %s299_s2 = inlined_call_operand.hbm [shape: f32[1,8], index: 2, kind: output, shape index: {}]  }
   0x1   :  { %v20_v0 = vld [vmem:[%s298_s1] sm:$0xff]  ;;  %v21_v1 = vld [vmem:[%s298_s1 + $0x8] sm:$0xff]  ;;  %v22_v2 = vld [vmem:[%s298_s1 + $0x10] sm:$0xff]  ;;  %203 = vmatprep.subr.bf16.mxu0 %v247_v3  ;;  %17 = vst.msk [vmem:[#allocation2] sm:$0xff] %vm16_vm0, %v248_v6 }
   0x2   :  { %v204_v4 = vpack.c.bf16 %v21_v1, %v20_v0  ;;  %v23_v5 = vld [vmem:[%s298_s1 + $0x18] sm:$0xff] }
   0x3   :  { %7 = vsyncpa [#allocation4], 0  ;;  %vm249_vm1 = vmmov 0   ;;  %v207_v7 = vpack.c.bf16 %v23_v5, %v22_v2  ;;  %v18_v8 = vld [vmem:[%s297_s0] sm:$0xff]  ;;  %vm24_vm2 = vcmask 261120   ;;  %s250_s0 = smov 1  }
   0x4   :  { %200 = vmatprep.mubr.msk.f32.mxu0 %vm249_vm1, %v248_v6  ;;  %205 = vmatpush3.bf16.msra.mxu0 %v204_v4  ;;  %s251_s1 = smov 127   ;;  %s252_s19 = smov [#allocation3]   ;;  %vm167_vm5 = vcmask 57344  }
   0x5   :  { %206 = vmatprep.subr.bf16.mxu0 %v247_v3  ;;  %s175_s20 = sshll.u32 %s252_s19, 4  ;;  %s176_s20 = int_to_ptr.vmem [resolvable:$true] %s175_s20 }
   0x6   :  { %s223_s21 = scalar_lea.vmem %s176_s20, 16  ;;  %s227_s22 = scalar_lea.vmem %s176_s20, 32 }
   0x7   :  { %p224_p0 = scmp.ne.s32.totalorder %s176_s20, %s223_s21  ;;  %p228_p1 = scmp.lt.s32.totalorder %s176_s20, %s176_s20 }
   0x8   :  { %208 = vmatpush3.bf16.msra.mxu0 %v207_v7  ;;  %v19_v9 = vld [vmem:[#allocation2] sm:$0xff]  ;;  %p229_p2 = scmp.lt.s32.totalorder %s227_s22, %s223_s21 }
   0xa   :  { %p230_p3 = por %p229_p2, %p228_p1 }
   0xb   :  { %201 = vmatmul.mubr.msk.f32.vlgmr.msra.gmra.mrb[0].mxu0 %vm24_vm2, %v18_v8 }
   0xc   :  { %p231_p4 = pnand %p230_p3, %p224_p0 }
  0xde   :  { %v94_v10 = vpop.f32.mrb[0].mxu0 }
  0xdf   :  { %v98_v11 = vadd.f32 %v94_v10, %v19_v9  ;;  %v202_v12 = vpop.f32.mrb[1].mxu0 }
  0xe1   :  { %100 = vst.msk [vmem:[#allocation2] sm:$0xff] %vm16_vm0, %v98_v11 }
  0xe8   :  { %v104_v13 = vld [vmem:[#allocation2] sm:$0xff] }
  0xe9   :  { %v184_v14 = vmul.f32 -1.442695, %v104_v13 }
  0xeb   :  { %215 = vpow2.f32 %v184_v14 }
  0xf5   :  { %v216_v15 = vpop.eup %215 }
  0xf6   :  { %v108_v16 = vadd.f32 1.0, %v216_v15 }
  0xf8   :  { %217 = vrcp.f32 %v108_v16 }
 0x102   :  { %v218_v17 = vpop.eup %217 }
 0x103   :  { %v111_v18 = vsub.f32 1.0, %v218_v17  ;;  %v185_v21 = vadd.f32 -0.5, %v218_v17 }
 0x105   :  { %v113_v19 = vmul.f32 %v218_v17, %v111_v18  ;;  %v186_v20 = vadd.f32 -0.5, %v111_v18 }
 0x107   :  { %219 = vrsqrt.f32 %v113_v19  ;;  %v128_v22 = vmul.f32 %v186_v20, %v185_v21  ;;  %vm116_vm3 = vcmp.eq.f32.partialorder %v113_v19, inf  ;;  %v119_v25 = vand.u32 2147483648, %v113_v19 }
 0x108   :  { %vm118_vm4 = vcmp.eq.f32.partialorder %v113_v19, 0.0  ;;  %221 = vtanh.f32 %v104_v13 }
 0x111   :  { %v220_v23 = vpop.eup %219 }
 0x112   :  { %v115_v24 = vmul.f32 %v220_v23, %v113_v19  ;;  %v222_v28 = vpop.eup %221 }
 0x114   :  { %v117_v26 = vsel %vm116_vm3, %v113_v19, %v115_v24 }
 0x115   :  { %v120_v27 = vsel %vm118_vm4, %v119_v25, %v117_v26 }
 0x116   :  { %122 = vrot.lane.b32.xlu0 %v120_v27, %s250_s0 }
 0x188   :  { %v123_v29 = vpop.permute.xlu0 %122 }
 0x189   :  { %v125_v30 = vmul.f32 %v222_v28, %v123_v29 }
 0x18b   :  { %v129_v31 = vmul.f32 %v125_v30, %v125_v30 }
 0x18d   :  { %131 = vrot.lane.b32.xlu0 %v129_v31, %s251_s1 }
 0x1ff   :  { %v132_v32 = vpop.permute.xlu0 %131 }
 0x200   :  { %v134_v33 = vsub.f32 %v128_v22, %v132_v32 }
 0x202   :  { %135 = vxpose.xlu1.b32.start.end [1/1] (short) (narrow) %v134_v33, 8 }
 0x282   :  { %v151_v34 = vpop.trf.xlu1 }
 0x283   :  { %168 = vst.msk [vmem:[#allocation3] sm:$0x1] %vm167_vm5, %v151_v34 }
 0x284   :  { %234 = shalt.err (!%p231_p4)
}
 0x285   :  { %s235_s25 = scalar_lea.hbm %s299_s2, 16 }
 0x286   :  { %p236_p5 = scmp.ne.s32.totalorder %s299_s2, %s235_s25  ;;  %p239_p6 = scmp.lt.u32.totalorder %s235_s25, %s299_s2 }
 0x288   :  { %p241_p7 = pnand %p239_p6, %p236_p5 }
 0x28a   :  { %244 = shalt.err (!%p241_p7)
}
 0x28b   :  { %178 = dma.vmem_to_hbm [thread:$0]  %s176_s20, 16, %s299_s2, [#allocation4]  }
 0x28c   :  { %245 = dma.done.wait [#allocation4], 16  }
 0x28d   :  { %246 = vsyncadd [#allocation4], 4294967280 }
 0x28e   :  { %182 = vsyncpa [#allocation4], 1 }

</bundles_post_ra>
